<compile_context>
chip_gen: v6e
topology: v6e:2x2x1
jax: 0.10.0
libtpu: 0.0.40
codegen_flags: <defaults>
</compile_context>

<pallas_src>
import functools

import jax
import jax.numpy as jnp
from jax.experimental import pallas as pl
from jax.experimental.pallas import tpu as pltpu


def _round_up(x, m):
    return (x + m - 1) // m * m


def _patch_embed_kernel(x_ref, perm_ref, w_ref, b_ref, o_ref, *,
                        C, W, p, Hp, Wp, E_pad, compute_dtype):
    # x_ref   : (1, C, H, W)        one NCHW image
    # perm_ref: (W, W)              0/1 lane-permutation matrix (resident)
    # w_ref   : (p, C*p, E_pad)     weight in (j, (c, i), e) order (resident)
    # b_ref   : (1, E_pad)          f32 bias (resident)
    # o_ref   : (1, Hp*Wp, E_pad)   output rows for this image
    bias = b_ref[...]                                  # (1, E_pad) f32
    for hp in range(Hp):
        # Contiguous (C, p, W) strip straight out of the NCHW block.
        strip = x_ref[0, :, hp * p:(hp + 1) * p, :]
        strip2d = strip.reshape(C * p, W)              # rows = (c, i), lanes = W
        # Lane permutation (wp*p + j) -> (j*Wp + wp) on the MXU (exact, 0/1):
        t = jnp.dot(strip2d, perm_ref[...],
                    preferred_element_type=jnp.float32)
        t = t.astype(compute_dtype)
        tT = t.T                                       # (W, C*p), rows ordered (j, wp)
        acc = jnp.zeros((Wp, E_pad), jnp.float32)
        for j in range(p):
            rows_j = tT[j * Wp:(j + 1) * Wp, :]        # (Wp, C*p): patches of this strip, offset j
            acc = acc + jnp.dot(rows_j, w_ref[j],
                                preferred_element_type=jnp.float32)
        o_ref[0, hp * Wp:(hp + 1) * Wp, :] = (acc + bias).astype(o_ref.dtype)


def patch_embed(x, weight, bias, patch_size):
    """x: (B, C, H, W); weight: (E, C, p, p); bias: (E,). Returns (B, N, E)."""
    B, C, H, W = x.shape
    p = patch_size
    E = weight.shape[0]
    assert weight.shape == (E, C, p, p)
    assert H % p == 0 and W % p == 0
    Hp, Wp = H // p, W // p
    N = Hp * Wp
    K = C * p * p
    cdt = x.dtype                                   # compute dtype follows the activations
    E_pad = max(_round_up(E, 128), 128)             # lane-dense output stores

    # Weight in the kernel's (j, (c, i), e) order, padded to E_pad lanes.
    w_k = jnp.transpose(weight, (3, 1, 2, 0)).reshape(p, C * p, E).astype(cdt)
    if E_pad != E:
        w_k = jnp.pad(w_k, ((0, 0), (0, 0), (0, E_pad - E)))
    b_row = bias.astype(jnp.float32).reshape(1, E)
    if E_pad != E:
        b_row = jnp.pad(b_row, ((0, 0), (0, E_pad - E)))

    # 0/1 lane-permutation: column wp*p + j of a strip moves to column j*Wp + wp,
    # so each per-j slab becomes a contiguous lane slice inside the kernel.
    win = jnp.arange(W)
    wout = (win % p) * Wp + (win // p)
    perm = jax.nn.one_hot(wout, W, dtype=cdt)       # (W, W)

    kernel = functools.partial(
        _patch_embed_kernel, C=C, W=W, p=p, Hp=Hp, Wp=Wp,
        E_pad=E_pad, compute_dtype=cdt)

    bpe = jnp.dtype(cdt).itemsize
    cost = pl.CostEstimate(
        flops=2 * B * N * K * E + 2 * B * Hp * (C * p) * W * W,
        transcendentals=0,
        bytes_accessed=(x.size * bpe + w_k.size * bpe + perm.size * bpe
                        + b_row.size * 4 + B * N * E_pad * bpe),
    )

    out = pl.pallas_call(
        kernel,
        out_shape=jax.ShapeDtypeStruct((B, N, E_pad), cdt),
        grid_spec=pltpu.PrefetchScalarGridSpec(
            num_scalar_prefetch=0,
            grid=(B,),
            in_specs=[
                # One image per step; last two block dims equal the full dims.
                pl.BlockSpec((1, C, H, W), lambda b: (b, 0, 0, 0)),
                # Resident operands: constant index_map -> DMA'd once.
                pl.BlockSpec((W, W), lambda b: (0, 0)),
                pl.BlockSpec((p, C * p, E_pad), lambda b: (0, 0, 0)),
                pl.BlockSpec((1, E_pad), lambda b: (0, 0)),
            ],
            out_specs=pl.BlockSpec((1, N, E_pad), lambda b: (b, 0, 0)),
        ),
        compiler_params=pltpu.CompilerParams(
            dimension_semantics=("parallel",),      # independent images -> megacore on v7x
            vmem_limit_bytes=32 * 1024 * 1024,
        ),
        cost_estimate=cost,
    )(x, perm, w_k, b_row)

    if E_pad != E:
        out = out[:, :, :E]
    return out


if __name__ == "__main__":
    # Small config consistent with the module: img=16, patch=4, C=4, E=32, B=2
    B, C, H, W = 2, 4, 16, 16
    patch_size = 4
    embed_dim = 32

    key = jax.random.PRNGKey(0)
    kx, kw, kb = jax.random.split(key, 3)
    x = jax.random.normal(kx, (B, C, H, W), dtype=jnp.float32)
    weight = (jax.random.normal(kw, (embed_dim, C, patch_size, patch_size),
                                dtype=jnp.float32) * 0.02)
    bias = jax.random.normal(kb, (embed_dim,), dtype=jnp.float32) * 0.02

    Hp, Wp = H // patch_size, W // patch_size

    # Pure-JAX reference (== nn.Conv2d stride=kernel, then flatten(2).transpose(1,2)).
    patches_ref = (
        x.reshape(B, C, Hp, patch_size, Wp, patch_size)
        .transpose(0, 2, 4, 1, 3, 5)
        .reshape(B * Hp * Wp, C * patch_size * patch_size)
    )
    ref = (patches_ref @ weight.reshape(embed_dim, -1).T + bias).reshape(
        B, Hp * Wp, embed_dim
    )

    # f32 path.
    out = patch_embed(x, weight, bias, patch_size)
    out = jax.block_until_ready(out)
    assert out.shape == (B, Hp * Wp, embed_dim)
    assert jnp.allclose(out, ref, atol=1e-4, rtol=1e-4)

    # bf16 fast path (bf16 MXU operands, f32 accumulation inside the kernel).
    out_bf16 = patch_embed(x.astype(jnp.bfloat16),
                           weight.astype(jnp.bfloat16),
                           bias, patch_size)
    out_bf16 = jax.block_until_ready(out_bf16)
    assert out_bf16.dtype == jnp.bfloat16
    assert jnp.allclose(out_bf16.astype(jnp.float32), ref, atol=5e-2, rtol=5e-2)

    print("KERNEL_OK")
</pallas_src>

<mosaic_0001>
module attributes {stable_mosaic.version = 11 : i64} {
  func.func @_patch_embed_kernel(%arg0: i32, %arg1: memref<1x4x16x16xf32, #tpu.memory_space<vmem>>, %arg2: memref<16x16xf32, #tpu.memory_space<vmem>>, %arg3: memref<4x16x128xf32, #tpu.memory_space<vmem>>, %arg4: memref<1x128xf32, #tpu.memory_space<vmem>>, %arg5: memref<1x16x128xf32, #tpu.memory_space<vmem>>) attributes {dimension_semantics = [#tpu.dimension_semantics<parallel>], iteration_bounds = array<i64: 2>, scalar_prefetch = 0 : i64, scratch_operands = 0 : i64, tpu.core_type = #tpu.core_type<tc>, window_params = [{transform_indices = @transform_0, window_bounds = array<i64: 1, 4, 16, 16>}, {pipeline_mode = #tpu.pipeline_mode<synchronous>, transform_indices = @transform_1, window_bounds = array<i64: 16, 16>}, {pipeline_mode = #tpu.pipeline_mode<synchronous>, transform_indices = @transform_2, window_bounds = array<i64: 4, 16, 128>}, {pipeline_mode = #tpu.pipeline_mode<synchronous>, transform_indices = @transform_3, window_bounds = array<i64: 1, 128>}, {transform_indices = @transform_4, window_bounds = array<i64: 1, 16, 128>}]} {
    %c0 = arith.constant 0 : index
    %c0_0 = arith.constant 0 : index
    %0 = vector.load %arg4[%c0, %c0_0] : memref<1x128xf32, #tpu.memory_space<vmem>>, vector<1x128xf32>
    %c0_1 = arith.constant 0 : index
    %c0_2 = arith.constant 0 : index
    %c0_3 = arith.constant 0 : index
    %c0_4 = arith.constant 0 : index
    %1 = vector.load %arg1[%c0_1, %c0_2, %c0_3, %c0_4] : memref<1x4x16x16xf32, #tpu.memory_space<vmem>>, vector<1x4x4x16xf32>
    %2 = vector.shape_cast %1 : vector<1x4x4x16xf32> to vector<4x4x16xf32>
    %3 = vector.shape_cast %2 : vector<4x4x16xf32> to vector<16x16xf32>
    %c0_5 = arith.constant 0 : index
    %c0_6 = arith.constant 0 : index
    %4 = vector.load %arg2[%c0_5, %c0_6] : memref<16x16xf32, #tpu.memory_space<vmem>>, vector<16x16xf32>
    %cst = arith.constant dense<0.000000e+00> : vector<16x16xf32>
    %5 = tpu.matmul %3, %4, %cst {dimension_numbers = #tpu.dot_dimension_numbers<[1], [0], [0], [1], [0, 0, 1, 1], [], []>} : vector<16x16xf32>, vector<16x16xf32>, vector<16x16xf32> -> vector<16x16xf32>
    %6 = tpu.transpose %5, [1, 0] : vector<16x16xf32> -> vector<16x16xf32>
    %cst_7 = arith.constant 0.000000e+00 : f32
    %7 = vector.broadcast %cst_7 : f32 to vector<4x128xf32>
    %8 = vector.extract_strided_slice %6 {offsets = [0, 0], sizes = [4, 16], strides = [1, 1]} : vector<16x16xf32> to vector<4x16xf32>
    %c0_8 = arith.constant 0 : index
    %c0_9 = arith.constant 0 : index
    %c0_10 = arith.constant 0 : index
    %9 = vector.load %arg3[%c0_8, %c0_9, %c0_10] : memref<4x16x128xf32, #tpu.memory_space<vmem>>, vector<1x16x128xf32>
    %10 = vector.shape_cast %9 : vector<1x16x128xf32> to vector<16x128xf32>
    %cst_11 = arith.constant dense<0.000000e+00> : vector<4x128xf32>
    %11 = tpu.matmul %8, %10, %cst_11 {dimension_numbers = #tpu.dot_dimension_numbers<[1], [0], [0], [1], [0, 0, 1, 1], [], []>} : vector<4x16xf32>, vector<16x128xf32>, vector<4x128xf32> -> vector<4x128xf32>
    %12 = arith.addf %7, %11 : vector<4x128xf32>
    %13 = vector.extract_strided_slice %6 {offsets = [4, 0], sizes = [4, 16], strides = [1, 1]} : vector<16x16xf32> to vector<4x16xf32>
    %c1 = arith.constant 1 : index
    %c0_12 = arith.constant 0 : index
    %c0_13 = arith.constant 0 : index
    %14 = vector.load %arg3[%c1, %c0_12, %c0_13] : memref<4x16x128xf32, #tpu.memory_space<vmem>>, vector<1x16x128xf32>
    %15 = vector.shape_cast %14 : vector<1x16x128xf32> to vector<16x128xf32>
    %cst_14 = arith.constant dense<0.000000e+00> : vector<4x128xf32>
    %16 = tpu.matmul %13, %15, %cst_14 {dimension_numbers = #tpu.dot_dimension_numbers<[1], [0], [0], [1], [0, 0, 1, 1], [], []>} : vector<4x16xf32>, vector<16x128xf32>, vector<4x128xf32> -> vector<4x128xf32>
    %17 = arith.addf %12, %16 : vector<4x128xf32>
    %18 = vector.extract_strided_slice %6 {offsets = [8, 0], sizes = [4, 16], strides = [1, 1]} : vector<16x16xf32> to vector<4x16xf32>
    %c2 = arith.constant 2 : index
    %c0_15 = arith.constant 0 : index
    %c0_16 = arith.constant 0 : index
    %19 = vector.load %arg3[%c2, %c0_15, %c0_16] : memref<4x16x128xf32, #tpu.memory_space<vmem>>, vector<1x16x128xf32>
    %20 = vector.shape_cast %19 : vector<1x16x128xf32> to vector<16x128xf32>
    %cst_17 = arith.constant dense<0.000000e+00> : vector<4x128xf32>
    %21 = tpu.matmul %18, %20, %cst_17 {dimension_numbers = #tpu.dot_dimension_numbers<[1], [0], [0], [1], [0, 0, 1, 1], [], []>} : vector<4x16xf32>, vector<16x128xf32>, vector<4x128xf32> -> vector<4x128xf32>
    %22 = arith.addf %17, %21 : vector<4x128xf32>
    %23 = vector.extract_strided_slice %6 {offsets = [12, 0], sizes = [4, 16], strides = [1, 1]} : vector<16x16xf32> to vector<4x16xf32>
    %c3 = arith.constant 3 : index
    %c0_18 = arith.constant 0 : index
    %c0_19 = arith.constant 0 : index
    %24 = vector.load %arg3[%c3, %c0_18, %c0_19] : memref<4x16x128xf32, #tpu.memory_space<vmem>>, vector<1x16x128xf32>
    %25 = vector.shape_cast %24 : vector<1x16x128xf32> to vector<16x128xf32>
    %cst_20 = arith.constant dense<0.000000e+00> : vector<4x128xf32>
    %26 = tpu.matmul %23, %25, %cst_20 {dimension_numbers = #tpu.dot_dimension_numbers<[1], [0], [0], [1], [0, 0, 1, 1], [], []>} : vector<4x16xf32>, vector<16x128xf32>, vector<4x128xf32> -> vector<4x128xf32>
    %27 = arith.addf %22, %26 : vector<4x128xf32>
    %28 = vector.broadcast %0 : vector<1x128xf32> to vector<4x128xf32>
    %29 = arith.addf %27, %28 : vector<4x128xf32>
    %c0_21 = arith.constant 0 : index
    %c0_22 = arith.constant 0 : index
    %c0_23 = arith.constant 0 : index
    %30 = vector.load %arg5[%c0_21, %c0_22, %c0_23] : memref<1x16x128xf32, #tpu.memory_space<vmem>>, vector<1x4x128xf32>
    %31 = vector.shape_cast %30 : vector<1x4x128xf32> to vector<4x128xf32>
    %32 = vector.shape_cast %29 : vector<4x128xf32> to vector<1x4x128xf32>
    tpu.vector_store %arg5[%c0_21, %c0_22, %c0_23], %32 {strides = array<i32>} : memref<1x16x128xf32, #tpu.memory_space<vmem>>, vector<1x4x128xf32>,
    %c0_24 = arith.constant 0 : index
    %c0_25 = arith.constant 0 : index
    %c4 = arith.constant 4 : index
    %c0_26 = arith.constant 0 : index
    %33 = vector.load %arg1[%c0_24, %c0_25, %c4, %c0_26] : memref<1x4x16x16xf32, #tpu.memory_space<vmem>>, vector<1x4x4x16xf32>
    %34 = vector.shape_cast %33 : vector<1x4x4x16xf32> to vector<4x4x16xf32>
    %35 = vector.shape_cast %34 : vector<4x4x16xf32> to vector<16x16xf32>
    %c0_27 = arith.constant 0 : index
    %c0_28 = arith.constant 0 : index
    %36 = vector.load %arg2[%c0_27, %c0_28] : memref<16x16xf32, #tpu.memory_space<vmem>>, vector<16x16xf32>
    %cst_29 = arith.constant dense<0.000000e+00> : vector<16x16xf32>
    %37 = tpu.matmul %35, %36, %cst_29 {dimension_numbers = #tpu.dot_dimension_numbers<[1], [0], [0], [1], [0, 0, 1, 1], [], []>} : vector<16x16xf32>, vector<16x16xf32>, vector<16x16xf32> -> vector<16x16xf32>
    %38 = tpu.transpose %37, [1, 0] : vector<16x16xf32> -> vector<16x16xf32>
    %cst_30 = arith.constant 0.000000e+00 : f32
    %39 = vector.broadcast %cst_30 : f32 to vector<4x128xf32>
    %40 = vector.extract_strided_slice %38 {offsets = [0, 0], sizes = [4, 16], strides = [1, 1]} : vector<16x16xf32> to vector<4x16xf32>
    %c0_31 = arith.constant 0 : index
    %c0_32 = arith.constant 0 : index
    %c0_33 = arith.constant 0 : index
    %41 = vector.load %arg3[%c0_31, %c0_32, %c0_33] : memref<4x16x128xf32, #tpu.memory_space<vmem>>, vector<1x16x128xf32>
    %42 = vector.shape_cast %41 : vector<1x16x128xf32> to vector<16x128xf32>
    %cst_34 = arith.constant dense<0.000000e+00> : vector<4x128xf32>
    %43 = tpu.matmul %40, %42, %cst_34 {dimension_numbers = #tpu.dot_dimension_numbers<[1], [0], [0], [1], [0, 0, 1, 1], [], []>} : vector<4x16xf32>, vector<16x128xf32>, vector<4x128xf32> -> vector<4x128xf32>
    %44 = arith.addf %39, %43 : vector<4x128xf32>
    %45 = vector.extract_strided_slice %38 {offsets = [4, 0], sizes = [4, 16], strides = [1, 1]} : vector<16x16xf32> to vector<4x16xf32>
    %c1_35 = arith.constant 1 : index
    %c0_36 = arith.constant 0 : index
    %c0_37 = arith.constant 0 : index
    %46 = vector.load %arg3[%c1_35, %c0_36, %c0_37] : memref<4x16x128xf32, #tpu.memory_space<vmem>>, vector<1x16x128xf32>
    %47 = vector.shape_cast %46 : vector<1x16x128xf32> to vector<16x128xf32>
    %cst_38 = arith.constant dense<0.000000e+00> : vector<4x128xf32>
    %48 = tpu.matmul %45, %47, %cst_38 {dimension_numbers = #tpu.dot_dimension_numbers<[1], [0], [0], [1], [0, 0, 1, 1], [], []>} : vector<4x16xf32>, vector<16x128xf32>, vector<4x128xf32> -> vector<4x128xf32>
    %49 = arith.addf %44, %48 : vector<4x128xf32>
    %50 = vector.extract_strided_slice %38 {offsets = [8, 0], sizes = [4, 16], strides = [1, 1]} : vector<16x16xf32> to vector<4x16xf32>
    %c2_39 = arith.constant 2 : index
    %c0_40 = arith.constant 0 : index
    %c0_41 = arith.constant 0 : index
    %51 = vector.load %arg3[%c2_39, %c0_40, %c0_41] : memref<4x16x128xf32, #tpu.memory_space<vmem>>, vector<1x16x128xf32>
    %52 = vector.shape_cast %51 : vector<1x16x128xf32> to vector<16x128xf32>
    %cst_42 = arith.constant dense<0.000000e+00> : vector<4x128xf32>
    %53 = tpu.matmul %50, %52, %cst_42 {dimension_numbers = #tpu.dot_dimension_numbers<[1], [0], [0], [1], [0, 0, 1, 1], [], []>} : vector<4x16xf32>, vector<16x128xf32>, vector<4x128xf32> -> vector<4x128xf32>
    %54 = arith.addf %49, %53 : vector<4x128xf32>
    %55 = vector.extract_strided_slice %38 {offsets = [12, 0], sizes = [4, 16], strides = [1, 1]} : vector<16x16xf32> to vector<4x16xf32>
    %c3_43 = arith.constant 3 : index
    %c0_44 = arith.constant 0 : index
    %c0_45 = arith.constant 0 : index
    %56 = vector.load %arg3[%c3_43, %c0_44, %c0_45] : memref<4x16x128xf32, #tpu.memory_space<vmem>>, vector<1x16x128xf32>
    %57 = vector.shape_cast %56 : vector<1x16x128xf32> to vector<16x128xf32>
    %cst_46 = arith.constant dense<0.000000e+00> : vector<4x128xf32>
    %58 = tpu.matmul %55, %57, %cst_46 {dimension_numbers = #tpu.dot_dimension_numbers<[1], [0], [0], [1], [0, 0, 1, 1], [], []>} : vector<4x16xf32>, vector<16x128xf32>, vector<4x128xf32> -> vector<4x128xf32>
    %59 = arith.addf %54, %58 : vector<4x128xf32>
    %60 = vector.broadcast %0 : vector<1x128xf32> to vector<4x128xf32>
    %61 = arith.addf %59, %60 : vector<4x128xf32>
    %c0_47 = arith.constant 0 : index
    %c4_48 = arith.constant 4 : index
    %c0_49 = arith.constant 0 : index
    %62 = vector.load %arg5[%c0_47, %c4_48, %c0_49] : memref<1x16x128xf32, #tpu.memory_space<vmem>>, vector<1x4x128xf32>
    %63 = vector.shape_cast %62 : vector<1x4x128xf32> to vector<4x128xf32>
    %64 = vector.shape_cast %61 : vector<4x128xf32> to vector<1x4x128xf32>
    tpu.vector_store %arg5[%c0_47, %c4_48, %c0_49], %64 {strides = array<i32>} : memref<1x16x128xf32, #tpu.memory_space<vmem>>, vector<1x4x128xf32>,
    %c0_50 = arith.constant 0 : index
    %c0_51 = arith.constant 0 : index
    %c8 = arith.constant 8 : index
    %c0_52 = arith.constant 0 : index
    %65 = vector.load %arg1[%c0_50, %c0_51, %c8, %c0_52] : memref<1x4x16x16xf32, #tpu.memory_space<vmem>>, vector<1x4x4x16xf32>
    %66 = vector.shape_cast %65 : vector<1x4x4x16xf32> to vector<4x4x16xf32>
    %67 = vector.shape_cast %66 : vector<4x4x16xf32> to vector<16x16xf32>
    %c0_53 = arith.constant 0 : index
    %c0_54 = arith.constant 0 : index
    %68 = vector.load %arg2[%c0_53, %c0_54] : memref<16x16xf32, #tpu.memory_space<vmem>>, vector<16x16xf32>
    %cst_55 = arith.constant dense<0.000000e+00> : vector<16x16xf32>
    %69 = tpu.matmul %67, %68, %cst_55 {dimension_numbers = #tpu.dot_dimension_numbers<[1], [0], [0], [1], [0, 0, 1, 1], [], []>} : vector<16x16xf32>, vector<16x16xf32>, vector<16x16xf32> -> vector<16x16xf32>
    %70 = tpu.transpose %69, [1, 0] : vector<16x16xf32> -> vector<16x16xf32>
    %cst_56 = arith.constant 0.000000e+00 : f32
    %71 = vector.broadcast %cst_56 : f32 to vector<4x128xf32>
    %72 = vector.extract_strided_slice %70 {offsets = [0, 0], sizes = [4, 16], strides = [1, 1]} : vector<16x16xf32> to vector<4x16xf32>
    %c0_57 = arith.constant 0 : index
    %c0_58 = arith.constant 0 : index
    %c0_59 = arith.constant 0 : index
    %73 = vector.load %arg3[%c0_57, %c0_58, %c0_59] : memref<4x16x128xf32, #tpu.memory_space<vmem>>, vector<1x16x128xf32>
    %74 = vector.shape_cast %73 : vector<1x16x128xf32> to vector<16x128xf32>
    %cst_60 = arith.constant dense<0.000000e+00> : vector<4x128xf32>
    %75 = tpu.matmul %72, %74, %cst_60 {dimension_numbers = #tpu.dot_dimension_numbers<[1], [0], [0], [1], [0, 0, 1, 1], [], []>} : vector<4x16xf32>, vector<16x128xf32>, vector<4x128xf32> -> vector<4x128xf32>
    %76 = arith.addf %71, %75 : vector<4x128xf32>
    %77 = vector.extract_strided_slice %70 {offsets = [4, 0], sizes = [4, 16], strides = [1, 1]} : vector<16x16xf32> to vector<4x16xf32>
    %c1_61 = arith.constant 1 : index
    %c0_62 = arith.constant 0 : index
    %c0_63 = arith.constant 0 : index
    %78 = vector.load %arg3[%c1_61, %c0_62, %c0_63] : memref<4x16x128xf32, #tpu.memory_space<vmem>>, vector<1x16x128xf32>
    %79 = vector.shape_cast %78 : vector<1x16x128xf32> to vector<16x128xf32>
    %cst_64 = arith.constant dense<0.000000e+00> : vector<4x128xf32>
    %80 = tpu.matmul %77, %79, %cst_64 {dimension_numbers = #tpu.dot_dimension_numbers<[1], [0], [0], [1], [0, 0, 1, 1], [], []>} : vector<4x16xf32>, vector<16x128xf32>, vector<4x128xf32> -> vector<4x128xf32>
    %81 = arith.addf %76, %80 : vector<4x128xf32>
    %82 = vector.extract_strided_slice %70 {offsets = [8, 0], sizes = [4, 16], strides = [1, 1]} : vector<16x16xf32> to vector<4x16xf32>
    %c2_65 = arith.constant 2 : index
    %c0_66 = arith.constant 0 : index
    %c0_67 = arith.constant 0 : index
    %83 = vector.load %arg3[%c2_65, %c0_66, %c0_67] : memref<4x16x128xf32, #tpu.memory_space<vmem>>, vector<1x16x128xf32>
    %84 = vector.shape_cast %83 : vector<1x16x128xf32> to vector<16x128xf32>
    %cst_68 = arith.constant dense<0.000000e+00> : vector<4x128xf32>
    %85 = tpu.matmul %82, %84, %cst_68 {dimension_numbers = #tpu.dot_dimension_numbers<[1], [0], [0], [1], [0, 0, 1, 1], [], []>} : vector<4x16xf32>, vector<16x128xf32>, vector<4x128xf32> -> vector<4x128xf32>
    %86 = arith.addf %81, %85 : vector<4x128xf32>
    %87 = vector.extract_strided_slice %70 {offsets = [12, 0], sizes = [4, 16], strides = [1, 1]} : vector<16x16xf32> to vector<4x16xf32>
    %c3_69 = arith.constant 3 : index
    %c0_70 = arith.constant 0 : index
    %c0_71 = arith.constant 0 : index
    %88 = vector.load %arg3[%c3_69, %c0_70, %c0_71] : memref<4x16x128xf32, #tpu.memory_space<vmem>>, vector<1x16x128xf32>
    %89 = vector.shape_cast %88 : vector<1x16x128xf32> to vector<16x128xf32>
    %cst_72 = arith.constant dense<0.000000e+00> : vector<4x128xf32>
    %90 = tpu.matmul %87, %89, %cst_72 {dimension_numbers = #tpu.dot_dimension_numbers<[1], [0], [0], [1], [0, 0, 1, 1], [], []>} : vector<4x16xf32>, vector<16x128xf32>, vector<4x128xf32> -> vector<4x128xf32>
    %91 = arith.addf %86, %90 : vector<4x128xf32>
    %92 = vector.broadcast %0 : vector<1x128xf32> to vector<4x128xf32>
    %93 = arith.addf %91, %92 : vector<4x128xf32>
    %c0_73 = arith.constant 0 : index
    %c8_74 = arith.constant 8 : index
    %c0_75 = arith.constant 0 : index
    %94 = vector.load %arg5[%c0_73, %c8_74, %c0_75] : memref<1x16x128xf32, #tpu.memory_space<vmem>>, vector<1x4x128xf32>
    %95 = vector.shape_cast %94 : vector<1x4x128xf32> to vector<4x128xf32>
    %96 = vector.shape_cast %93 : vector<4x128xf32> to vector<1x4x128xf32>
    tpu.vector_store %arg5[%c0_73, %c8_74, %c0_75], %96 {strides = array<i32>} : memref<1x16x128xf32, #tpu.memory_space<vmem>>, vector<1x4x128xf32>,
    %c0_76 = arith.constant 0 : index
    %c0_77 = arith.constant 0 : index
    %c12 = arith.constant 12 : index
    %c0_78 = arith.constant 0 : index
    %97 = vector.load %arg1[%c0_76, %c0_77, %c12, %c0_78] : memref<1x4x16x16xf32, #tpu.memory_space<vmem>>, vector<1x4x4x16xf32>
    %98 = vector.shape_cast %97 : vector<1x4x4x16xf32> to vector<4x4x16xf32>
    %99 = vector.shape_cast %98 : vector<4x4x16xf32> to vector<16x16xf32>
    %c0_79 = arith.constant 0 : index
    %c0_80 = arith.constant 0 : index
    %100 = vector.load %arg2[%c0_79, %c0_80] : memref<16x16xf32, #tpu.memory_space<vmem>>, vector<16x16xf32>
    %cst_81 = arith.constant dense<0.000000e+00> : vector<16x16xf32>
    %101 = tpu.matmul %99, %100, %cst_81 {dimension_numbers = #tpu.dot_dimension_numbers<[1], [0], [0], [1], [0, 0, 1, 1], [], []>} : vector<16x16xf32>, vector<16x16xf32>, vector<16x16xf32> -> vector<16x16xf32>
    %102 = tpu.transpose %101, [1, 0] : vector<16x16xf32> -> vector<16x16xf32>
    %cst_82 = arith.constant 0.000000e+00 : f32
    %103 = vector.broadcast %cst_82 : f32 to vector<4x128xf32>
    %104 = vector.extract_strided_slice %102 {offsets = [0, 0], sizes = [4, 16], strides = [1, 1]} : vector<16x16xf32> to vector<4x16xf32>
    %c0_83 = arith.constant 0 : index
    %c0_84 = arith.constant 0 : index
    %c0_85 = arith.constant 0 : index
    %105 = vector.load %arg3[%c0_83, %c0_84, %c0_85] : memref<4x16x128xf32, #tpu.memory_space<vmem>>, vector<1x16x128xf32>
    %106 = vector.shape_cast %105 : vector<1x16x128xf32> to vector<16x128xf32>
    %cst_86 = arith.constant dense<0.000000e+00> : vector<4x128xf32>
    %107 = tpu.matmul %104, %106, %cst_86 {dimension_numbers = #tpu.dot_dimension_numbers<[1], [0], [0], [1], [0, 0, 1, 1], [], []>} : vector<4x16xf32>, vector<16x128xf32>, vector<4x128xf32> -> vector<4x128xf32>
    %108 = arith.addf %103, %107 : vector<4x128xf32>
    %109 = vector.extract_strided_slice %102 {offsets = [4, 0], sizes = [4, 16], strides = [1, 1]} : vector<16x16xf32> to vector<4x16xf32>
    %c1_87 = arith.constant 1 : index
    %c0_88 = arith.constant 0 : index
    %c0_89 = arith.constant 0 : index
    %110 = vector.load %arg3[%c1_87, %c0_88, %c0_89] : memref<4x16x128xf32, #tpu.memory_space<vmem>>, vector<1x16x128xf32>
    %111 = vector.shape_cast %110 : vector<1x16x128xf32> to vector<16x128xf32>
    %cst_90 = arith.constant dense<0.000000e+00> : vector<4x128xf32>
    %112 = tpu.matmul %109, %111, %cst_90 {dimension_numbers = #tpu.dot_dimension_numbers<[1], [0], [0], [1], [0, 0, 1, 1], [], []>} : vector<4x16xf32>, vector<16x128xf32>, vector<4x128xf32> -> vector<4x128xf32>
    %113 = arith.addf %108, %112 : vector<4x128xf32>
    %114 = vector.extract_strided_slice %102 {offsets = [8, 0], sizes = [4, 16], strides = [1, 1]} : vector<16x16xf32> to vector<4x16xf32>
    %c2_91 = arith.constant 2 : index
    %c0_92 = arith.constant 0 : index
    %c0_93 = arith.constant 0 : index
    %115 = vector.load %arg3[%c2_91, %c0_92, %c0_93] : memref<4x16x128xf32, #tpu.memory_space<vmem>>, vector<1x16x128xf32>
    %116 = vector.shape_cast %115 : vector<1x16x128xf32> to vector<16x128xf32>
    %cst_94 = arith.constant dense<0.000000e+00> : vector<4x128xf32>
    %117 = tpu.matmul %114, %116, %cst_94 {dimension_numbers = #tpu.dot_dimension_numbers<[1], [0], [0], [1], [0, 0, 1, 1], [], []>} : vector<4x16xf32>, vector<16x128xf32>, vector<4x128xf32> -> vector<4x128xf32>
    %118 = arith.addf %113, %117 : vector<4x128xf32>
    %119 = vector.extract_strided_slice %102 {offsets = [12, 0], sizes = [4, 16], strides = [1, 1]} : vector<16x16xf32> to vector<4x16xf32>
    %c3_95 = arith.constant 3 : index
    %c0_96 = arith.constant 0 : index
    %c0_97 = arith.constant 0 : index
    %120 = vector.load %arg3[%c3_95, %c0_96, %c0_97] : memref<4x16x128xf32, #tpu.memory_space<vmem>>, vector<1x16x128xf32>
    %121 = vector.shape_cast %120 : vector<1x16x128xf32> to vector<16x128xf32>
    %cst_98 = arith.constant dense<0.000000e+00> : vector<4x128xf32>
    %122 = tpu.matmul %119, %121, %cst_98 {dimension_numbers = #tpu.dot_dimension_numbers<[1], [0], [0], [1], [0, 0, 1, 1], [], []>} : vector<4x16xf32>, vector<16x128xf32>, vector<4x128xf32> -> vector<4x128xf32>
    %123 = arith.addf %118, %122 : vector<4x128xf32>
    %124 = vector.broadcast %0 : vector<1x128xf32> to vector<4x128xf32>
    %125 = arith.addf %123, %124 : vector<4x128xf32>
    %c0_99 = arith.constant 0 : index
    %c12_100 = arith.constant 12 : index
    %c0_101 = arith.constant 0 : index
    %126 = vector.load %arg5[%c0_99, %c12_100, %c0_101] : memref<1x16x128xf32, #tpu.memory_space<vmem>>, vector<1x4x128xf32>
    %127 = vector.shape_cast %126 : vector<1x4x128xf32> to vector<4x128xf32>
    %128 = vector.shape_cast %125 : vector<4x128xf32> to vector<1x4x128xf32>
    tpu.vector_store %arg5[%c0_99, %c12_100, %c0_101], %128 {strides = array<i32>} : memref<1x16x128xf32, #tpu.memory_space<vmem>>, vector<1x4x128xf32>,
    return
  }
  func.func @transform_0(%arg0: i32) -> (i32, i32, i32, i32) {
    %c0_i32 = arith.constant 0 : i32
    %c0_i32_0 = arith.constant 0 : i32
    %c0_i32_1 = arith.constant 0 : i32
    %c0_i32_2 = arith.constant 0 : i32
    return %arg0, %c0_i32, %c0_i32_0, %c0_i32_1 : i32, i32, i32, i32
  }
  func.func @transform_1(%arg0: i32) -> (i32, i32) {
    %c0_i32 = arith.constant 0 : i32
    %c0_i32_0 = arith.constant 0 : i32
    %c0_i32_1 = arith.constant 0 : i32
    return %c0_i32, %c0_i32_0 : i32, i32
  }
  func.func @transform_2(%arg0: i32) -> (i32, i32, i32) {
    %c0_i32 = arith.constant 0 : i32
    %c0_i32_0 = arith.constant 0 : i32
    %c0_i32_1 = arith.constant 0 : i32
    %c0_i32_2 = arith.constant 0 : i32
    return %c0_i32, %c0_i32_0, %c0_i32_1 : i32, i32, i32
  }
  func.func @transform_3(%arg0: i32) -> (i32, i32) {
    %c0_i32 = arith.constant 0 : i32
    %c0_i32_0 = arith.constant 0 : i32
    %c0_i32_1 = arith.constant 0 : i32
    return %c0_i32, %c0_i32_0 : i32, i32
  }
  func.func @transform_4(%arg0: i32) -> (i32, i32, i32) {
    %c0_i32 = arith.constant 0 : i32
    %c0_i32_0 = arith.constant 0 : i32
    %c0_i32_1 = arith.constant 0 : i32
    return %arg0, %c0_i32, %c0_i32_0 : i32, i32, i32
  }
}

</mosaic_0001>

<bundles_post_ra>
// kernel: tpu_custom_call.1
= control target key start
LH: loop header
LB: loop body
LE: loop exit
PB: predicated region body
PF: predicated region fallthrough
CT: control target
= control target key end

     0   :  { %9 = vsyncpa [#allocation3], 0  ;;  %s2965_s0 = inlined_call_operand.hbm [shape: f32[2,4,16,16], index: 0, kind: input, shape index: {}]   ;;  %s2966_s1 = inlined_call_operand.hbm [shape: f32[16,16], index: 1, kind: input, shape index: {}]   ;;  %s2967_s2 = inlined_call_operand.hbm [shape: f32[4,16,128], index: 2, kind: input, shape index: {}]   ;;  %s2968_s3 = inlined_call_operand.vmem [shape: f32[1,128], index: 3, kind: input, shape index: {}]   ;;  %s2969_s4 = inlined_call_operand.hbm [shape: f32[2,16,128], index: 4, kind: output, shape index: {}]  }
   0x1   :  { %11 = vsyncpa [#allocation3 + $0x1], 0 }
   0x2   :  { %12 = vsyncpa [#allocation6], 0 }
   0x3   :  { %13 = vsyncpa [#allocation4], 0 }
   0x4   :  { %15 = vsyncpa [#allocation4 + $0x1], 0  ;;  %s2585_s15 = smov 0   ;;  %s2587_s16 = smov 0  }
   0x5   :  { %s2589_s17 = smov 0   ;;  %s2591_s18 = smov 0  }
   0x6 LB: > { %s2606_s19 = sadd.s32 4294967295, %s2548_s18   ;;  %s2070_s20 = sadd.s32 4294967294, %s2548_s18   ;;  %s2548_s18 = sphi %s2591_s18, %s2990_s18   ;;  %s2544_s17 = sphi %s2589_s17, %s2989_s17   ;;  %s2540_s16 = sphi %s2587_s16, %s2988_s16   ;;  %s2536_s15 = sphi %s2585_s15, %s2987_s15  }
   0x7   : > { %p41_p0 = scmp.ne.s32.totalorder %s2540_s16, %s2536_s15  ;;  %p2970_p1 = scmp.eq.s32.totalorder %s2606_s19, 0 }
   0x8   : > { %p128_p2 = scmp.eq.s32.totalorder %s2606_s19, 1  ;;  %p134_p3 = scmp.eq.s32.totalorder %s2070_s20, 1 }
   0x9   : > { %p2615_p4 = por %p2970_p1, %p41_p0  ;;  %p2071_p5 = scmp.ge.s32.totalorder %s2548_s18, 1 }
   0xa   : > { %p2620_p6 = por %p134_p3, %p41_p0  ;;  %p141_p7 = scmp.lt.s32.totalorder %s2548_s18, 3 }
   0xb   : > { %s2974_s21 = scalar_select %p2615_p4, 1, 0 }
   0xc   : > { %s2975_s22 = scalar_select %p2620_p6, 1, 0 }
   0xd   : > { %p2625_p8 = pnand %p2071_p5, %p141_p7  ;;  %s2550_s24 = smov [#allocation5]  }
   0xe   : > { %s153_s25 = sshll.u32 %s2550_s24, 4  ;;  %s2551_s27 = smov [#allocation7]   ;;  %s154_s25 = int_to_ptr.vmem [resolvable:$true] %s153_s25 }
   0xf   : > { %s2976_s23 = scalar_select %p2625_p8, 1, 0 }
  0x10   : > { %p2331_p9 = pneg %p2625_p8  ;;  %s166_s28 = sshll.u32 %s2551_s27, 4  ;;  %s167_s28 = int_to_ptr.vmem [resolvable:$true] %s166_s28 }
  0x11   : > { %s2411_s29 = scalar_lea.vmem %s154_s25, 256  ;;  %p2419_p5 = scmp.lt.s32.totalorder %s154_s25, %s154_s25 }
  0x12   : > { %p2634_p11 = pnand %p2331_p9, %p2970_p1  ;;  %p2412_p13 = scmp.ne.s32.totalorder %s154_s25, %s2411_s29 }
  0x13   : > { %p2420_p7 = scmp.lt.s32.totalorder %s2411_s29, %s2411_s29 }
  0x14   : > { %p2402_p12 = pneg %p2634_p11 }
  0x15   : > { %p2421_p10 = por %p2420_p7, %p2419_p5 }
  0x16   : > { %p2414_p0 = pnand %p2412_p13, %p2402_p12 }
  0x18   : > { %p2415_p3 = pneg %p2414_p0 }
  0x1a   : > { %p2422_p9 = pnand %p2421_p10, %p2415_p3 }
  0x1c   : > { %2425 = shalt.err (!%p2422_p9)
}
  0x1d   : > { %s2552_s30 = smov 128   ;;  %s2553_s5 = smov 8  }
  0x1e   : > { %2334 = dma.hbm_to_vmem [thread:$0]  (!%p2634_p11), %s2966_s1, 256, %s154_s25, [#allocation6], %s2552_s30, %s2552_s30, %s2553_s5  }
  0x1f   : > { %s2437_s8 = scalar_lea.vmem %s167_s28, 1024  ;;  %p2445_p10 = scmp.lt.s32.totalorder %s167_s28, %s167_s28 }
  0x20   : > { %p2438_p13 = scmp.ne.s32.totalorder %s167_s28, %s2437_s8  ;;  %p2446_p3 = scmp.lt.s32.totalorder %s2437_s8, %s2437_s8 }
  0x22   : > { %p2440_p0 = pnand %p2438_p13, %p2402_p12  ;;  %p2447_p7 = por %p2446_p3, %p2445_p10 }
  0x24   : > { %p2441_p5 = pneg %p2440_p0 }
  0x26   : > { %p2448_p9 = pnand %p2447_p7, %p2441_p5 }
  0x28   : > { %2451 = shalt.err (!%p2448_p9)
}
  0x29   : > { %2337 = dma.hbm_to_vmem [thread:$0]  (!%p2634_p11), %s2967_s2, 1024, %s167_s28, [#allocation6], %s2552_s30, %s2552_s30, %s2553_s5  }
  0x2a   : > { %s2663_s11 = sadd.s32 1, %s2548_s18   ;;  %s28_s12 = sadd.s32 1, %s2544_s17 }
  0x2b   : > { %s25_s13 = ssub.s32 %s2548_s18, %s2663_s11  ;;  %p35_p12 = scmp.ne.s32.totalorder %s2544_s17, %s2540_s16 }
  0x2c   : > { %p26_p13 = scmp.eq.s32.totalorder %s25_s13, 0  ;;  %p36_p0 = scmp.eq.s32.totalorder %s2548_s18, 0 }
  0x2d   : > { %p2673_p5 = por %p128_p2, %p35_p12  ;;  %p2348_p10 = scmp.lt.s32.totalorder %s2548_s18, 2 }
  0x2e   : > { %s2679_s20 = scalar_select %p26_p13, %s2544_s17, %s28_s12  }
  0x2f   : > { %s2978_s14 = scalar_select %p2673_p5, 1, 0 }
  0x30   : > { %p37_p3 = por %p36_p0, %p35_p12  ;;  %s183_s24 = sand.u32 1, %s2544_s17  }
  0x31   : > { %s2075_s25 = sshll.u32 %s183_s24, 6  ;;  %s2113_s26 = sshll.u32 %s2548_s18, 10 }
  0x32   : > { %s2686_s29 = scalar_lea.hbm %s2965_s0, %s2113_s26  ;;  %s187_s6 = scalar_lea.vmem [#allocation2], %s2075_s25 }
  0x33   : > { %s194_s7 = sshll.u32 %s187_s6, 4  ;;  %p2690_p2 = pnand %p2348_p10, %p37_p3  ;;  %s2688_s7 = int_to_ptr.vmem [resolvable:$true] %s194_s7 }
  0x34   : > { %s2694_s9 = scalar_lea.sflag [#allocation3], %s183_s24  ;;  %s2452_s10 = scalar_lea.hbm %s2686_s29, 1024 }
  0x35   : > { %p2453_p11 = scmp.ne.s32.totalorder %s2686_s29, %s2452_s10  ;;  %p2454_p7 = pneg %p2690_p2 }
  0x36   : > { %s2457_s25 = scalar_lea.hbm %s2965_s0, 2048  ;;  %p2458_p13 = scmp.lt.s32.totalorder %s2686_s29, %s2965_s0 }
  0x37   : > { %p2455_p9 = pnand %p2454_p7, %p2453_p11  ;;  %p2459_p0 = scmp.lt.s32.totalorder %s2457_s25, %s2452_s10 }
  0x39   : > { %p2456_p12 = pneg %p2455_p9  ;;  %p2460_p10 = por %p2459_p0, %p2458_p13 }
  0x3b   : > { %p2461_p3 = pnand %p2460_p10, %p2456_p12 }
  0x3d   : > { %2464 = shalt.err (!%p2461_p3)
}
  0x3e   : > { %s2465_s24 = scalar_lea.vmem %s2688_s7, 1024  ;;  %s2554_s28 = smov [#allocation2]  }
  0x3f   : > { %p2466_p1 = scmp.ne.s32.totalorder %s2688_s7, %s2465_s24  ;;  %s2470_s6 = sshll.u32 %s2554_s28, 4  ;;  %s2471_s6 = int_to_ptr.vmem [resolvable:$false] %s2470_s6 }
  0x40   : > { %s2472_s12 = scalar_lea.vmem %s2471_s6, 2048  ;;  %p2473_p9 = scmp.lt.s32.totalorder %s2688_s7, %s2471_s6 }
  0x41   : > { %p2468_p6 = pnand %p2466_p1, %p2454_p7  ;;  %p2474_p5 = scmp.lt.s32.totalorder %s2472_s12, %s2465_s24 }
  0x43   : > { %p2469_p11 = pneg %p2468_p6  ;;  %p2475_p4 = por %p2474_p5, %p2473_p9 }
  0x45   : > { %p2476_p8 = pnand %p2475_p4, %p2469_p11 }
  0x47   : > { %2479 = shalt.err (!%p2476_p8)
}
  0x48   : > { %2341 = dma.hbm_to_vmem [thread:$0]  (!%p2690_p2), %s2686_s29, 1024, %s2688_s7, %s2694_s9, %s2552_s30, %s2552_s30, %s2553_s5  }
  0x49   : > { %p2980_p1 = scmp.ne.s32.totalorder %s2976_s23, 0 }
  0x4a   : > { %s2721_s10 = sand.u32 (!%p2980_p1), 1, %s2540_s16   ;;  %p2981_p4 = scmp.ne.s32.totalorder (!%p2980_p1), %s2974_s21, 0 }
  0x4b   : > { %206 = sbr.rel (%p2980_p1) target bundleno = 1618 (0x652), region = 36  ;;  %s2079_s13 = sshll.u32 (!%p2980_p1), %s2721_s10, 6 }
  0x4c   : > { %s209_s25 = scalar_lea.sflag (!%p2980_p1), [#allocation3], %s2721_s10  ;;  %s2725_s26 = scalar_lea.vmem (!%p2980_p1), [#allocation2], %s2079_s13 }
  0x50   : > { %2523 = dma.done.wait (%p2981_p4), %s209_s25, 1024  }
  0x51   : > { %2525 = vsyncadd (%p2981_p4), %s209_s25, 4294966272  ;;  %p2982_p6 = scmp.eq.s32.totalorder %s2606_s19, 0 }
  0x53   : > { %2527 = dma.done.wait (%p2982_p6), [#allocation6], 1280   ;;  %p2983_p8 = pmov %p2982_p6 }
  0x54   : > { %v2735_v0 = vld [vmem:[#allocation5 + $0x8] sm:$0xff]  ;;  %v2737_v1 = vld [vmem:[#allocation5] sm:$0xff]  ;;  %vm258_vm0 = vcmask 130048   ;;  %v2747_v4 = vld [vmem:[#allocation7 + $0x8] sm:$0xff]  ;;  %v2555_v6 = vmov 0.0   ;;  %vm2556_vm1 = vmmov 0  }
  0x55   : > { %2529 = vsyncadd (%p2983_p8), [#allocation6], 4294966016  ;;  %2179 = vmatprep.subr.mxu0 %v2735_v0  ;;  %v2392_v2 = vld [vmem:[%s2725_s26] ss:$16 sps:$4 sm:$0xff]   ;;  %v2749_v5 = vld [vmem:[#allocation7 + $0x18] sm:$0xff]  ;;  %2186 = vmatprep.subr.mxu1 %v2555_v6  ;;  %s2082_s21 = sshll.u32 %s2721_s10, 4 }
  0x56   : > { %2180 = vmatpush3.msra.mxu0 %v2735_v0  ;;  %v2393_v3 = vld [vmem:[%s2725_s26 + $0x20] ss:$16 sps:$4 sm:$0xff]   ;;  %2183 = vmatprep.mubr.msk.f32.mxu0 %vm258_vm0, %v2392_v2  ;;  %v2769_v11 = vld [vmem:[#allocation7 + $0x38] sm:$0xff]  ;;  %v2772_v14 = vld [vmem:[#allocation7 + $0x28] sm:$0xff]  ;;  %s2820_s5 = scalar_lea.vmem [#allocation8], %s2082_s21  ;;  %s2114_s7 = sshll.u32 %s2606_s19, 8 }
  0x57   : > { %2181 = vmatprep.subr.mxu0 %v2737_v1  ;;  %v2753_v7 = vld [vmem:[#allocation7] sm:$0xff]  ;;  %2187 = vmatpush3.msra.mxu1 %v2749_v5  ;;  %v2765_v9 = vld [vmem:[#allocation7 + $0x10] sm:$0xff]  ;;  %v2396_v40 = vld [vmem:[%s2725_s26 + $0x8] ss:$16 sps:$4 sm:$0xff]   ;;  %s1978_s29 = sshll.u32 %s2820_s5, 4  ;;  %s2920_s27 = scalar_lea.hbm %s2969_s4, %s2114_s7  ;;  %s2915_s29 = int_to_ptr.vmem [resolvable:$true] %s1978_s29 }
  0x58   : > { %2182 = vmatpush3.msra.mxu0 %v2737_v1  ;;  %2188 = vmatprep.subr.mxu1 %v2555_v6  ;;  %v2775_v15 = vld [vmem:[#allocation7 + $0x30] sm:$0xff]  ;;  %v2780_v16 = vld [vmem:[#allocation7 + $0x20] sm:$0xff]  ;;  %v2397_v41 = vld [vmem:[%s2725_s26 + $0x28] ss:$16 sps:$4 sm:$0xff]   ;;  %s1965_s24 = scalar_lea.sflag [#allocation4], %s2721_s10  ;;  %s2480_s28 = scalar_lea.vmem %s2915_s29, 256 }
  0x59   : > { %2184 = vmatmul.mubr.msk.f32.vlgmr.msra.gmra.mxu0 %vm258_vm0, %v2393_v3  ;;  %2193 = vmatprep.subr.mxu0 %v2555_v6  ;;  %v2394_v19 = vld [vmem:[%s2725_s26 + $0x4] ss:$16 sps:$4 sm:$0xff]   ;;  %v2817_v29 = vld [vmem:[%s2968_s3] ss:$0 sm:$0xff]  ;;  %v2398_v60 = vld [vmem:[%s2725_s26 + $0xc] ss:$16 sps:$4 sm:$0xff]   ;;  %p2481_p5 = scmp.ne.s32.totalorder %s2915_s29, %s2480_s28 }
  0x5a   : > { %2194 = vmatpush3.msra.mxu0 %v2747_v4  ;;  %2197 = vmatprep.mubr.msk.f32.mxu0 %vm2556_vm1, %v2555_v6  ;;  %v2395_v20 = vld [vmem:[%s2725_s26 + $0x24] ss:$16 sps:$4 sm:$0xff]   ;;  %v2399_v61 = vld [vmem:[%s2725_s26 + $0x2c] ss:$16 sps:$4 sm:$0xff]   ;;  %p2984_p2 = scmp.ne.s32.totalorder %s2978_s14, 0  ;;  %s2557_s19 = smov [#allocation8]  }
  0x5b   : > { %2195 = vmatprep.subr.mxu0 %v2555_v6  ;;  %2190 = vmatprep.mubr.msk.f32.mxu1 %vm2556_vm1, %v2555_v6  ;;  %s2484_s6 = sshll.u32 %s2557_s19, 4  ;;  %s2485_s6 = int_to_ptr.vmem [resolvable:$false] %s2484_s6 }
  0x5c   : > { %2196 = vmatpush3.msra.mxu0 %v2753_v7  ;;  %2189 = vmatpush3.msra.mxu1 %v2765_v9  ;;  %p2482_p7 = pnand %p2481_p5, %p2984_p2  ;;  %s2486_s12 = scalar_lea.vmem %s2485_s6, 512 }
  0x5d   : > { %2207 = vmatprep.subr.mxu0 %v2555_v6  ;;  %2200 = vmatprep.subr.mxu1 %v2555_v6  ;;  %p2487_p13 = scmp.lt.s32.totalorder %s2915_s29, %s2485_s6  ;;  %p2488_p0 = scmp.lt.s32.totalorder %s2486_s12, %s2480_s28 }
  0x5e   : > { %p2483_p12 = pneg %p2482_p7 }
  0x5f   : > { %p2489_p10 = por %p2488_p0, %p2487_p13 }
  0x61   : > { %p2490_p3 = pnand %p2489_p10, %p2483_p12 }
 0x119   : > { %v2185_v8 = vpop.f32.mrf.mxu0 }
 0x11b   : > { %v329_v10 = vpop.f32.mrf.mxu0 }
 0x11c   : > { %338 = vxpose.xlu0.b32.start [1/2] (short) (narrow) %v329_v10, 16 }
 0x120   : > { %339 = vxpose.xlu0.b32.end [2/2] (short) (narrow) %v2185_v8, 16 }
 0x198   : > { %v354_v12 = vpop.trf.xlu0 }
 0x199   : > { %v376_v13 = vrot.slane %v354_v12, 4  ;;  %2198 = vmatmul.mubr.msk.f32.vlgmr.msra.gmra.mxu0 %vm258_vm0, %v354_v12 }
 0x19a   : > { %2208 = vmatpush3.msra.mxu0 %v2769_v11  ;;  %2211 = vmatprep.mubr.msk.f32.mxu0 %vm2556_vm1, %v2555_v6 }
 0x19b   : > { %2191 = vmatmul.mubr.msk.f32.vlgmr.msra.gmra.mxu1 %vm258_vm0, %v376_v13  ;;  %2209 = vmatprep.subr.mxu0 %v2555_v6 }
 0x19c   : > { %2201 = vmatpush3.msra.mxu1 %v2772_v14  ;;  %v355_v17 = vpop.trf.xlu0  ;;  %2204 = vmatprep.mubr.msk.f32.mxu1 %vm2556_vm1, %v2555_v6 }
 0x19d   : > { %2202 = vmatprep.subr.mxu1 %v2555_v6  ;;  %v601_v18 = vrot.slane %v355_v17, 4  ;;  %2210 = vmatpush3.msra.mxu0 %v2775_v15 }
 0x19e   : > { %2203 = vmatpush3.msra.mxu1 %v2780_v16  ;;  %2221 = vmatprep.subr.mxu0 %v2555_v6 }
 0x19f   : > { %2214 = vmatprep.subr.mxu1 %v2735_v0  ;;  %2205 = vmatmul.mubr.msk.f32.vlgmr.msra.gmra.mxu1 %vm258_vm0, %v355_v17 }
 0x1a0   : > { %2212 = vmatmul.mubr.msk.f32.vlgmr.msra.gmra.mxu0 %vm258_vm0, %v601_v18  ;;  %2215 = vmatpush3.msra.mxu1 %v2735_v0 }
 0x1a1   : > { %2216 = vmatprep.subr.mxu1 %v2737_v1  ;;  %2218 = vmatprep.mubr.msk.f32.mxu1 %vm258_vm0, %v2394_v19 }
 0x1a2   : > { %2217 = vmatpush3.msra.mxu1 %v2737_v1  ;;  %2222 = vmatpush3.msra.mxu0 %v2749_v5 }
 0x1a3   : > { %2219 = vmatmul.mubr.msk.f32.vlgmr.msra.gmra.mxu1 %vm258_vm0, %v2395_v20  ;;  %2228 = vmatprep.subr.mxu1 %v2555_v6 }
 0x1a4   : > { %2229 = vmatpush3.msra.mxu1 %v2747_v4  ;;  %2232 = vmatprep.mubr.msk.f32.mxu1 %vm2556_vm1, %v2555_v6 }
 0x1a5   : > { %2230 = vmatprep.subr.mxu1 %v2555_v6  ;;  %2223 = vmatprep.subr.mxu0 %v2555_v6 }
 0x1a6   : > { %2231 = vmatpush3.msra.mxu1 %v2753_v7  ;;  %2224 = vmatpush3.msra.mxu0 %v2765_v9 }
 0x1a7   : > { %2225 = vmatprep.mubr.msk.f32.mxu0 %vm2556_vm1, %v2555_v6  ;;  %2235 = vmatprep.subr.mxu0 %v2555_v6 }
 0x1a8   : > { %2242 = vmatprep.subr.mxu1 %v2555_v6 }
 0x259   : > { %v517_v21 = vpop.f32.mrf.mxu0 }
 0x25b   : > { %v445_v22 = vpop.f32.mrf.mxu1  ;;  %v2199_v23 = vpop.f32.mrf.mxu0 }
 0x25c   : > { %v518_v25 = vadd.f32 %v517_v21, %v445_v22 }
 0x25d   : > { %v2192_v24 = vpop.f32.mrf.mxu1 }
 0x25f   : > { %v593_v26 = vpop.f32.mrf.mxu1 }
 0x260   : > { %v597_v27 = vadd.f32 %v593_v26, %v518_v25  ;;  %v670_v28 = vpop.f32.mrf.mxu0 }
 0x261   : > { %v2206_v30 = vpop.f32.mrf.mxu1 }
 0x262   : > { %v674_v31 = vadd.f32 %v670_v28, %v597_v27  ;;  %v2213_v32 = vpop.f32.mrf.mxu0 }
 0x263   : > { %v2220_v33 = vpop.f32.mrf.mxu1 }
 0x264   : > { %v681_v34 = vadd.f32 %v2817_v29, %v674_v31 }
 0x265   : > { %v765_v35 = vpop.f32.mrf.mxu1 }
 0x266   : > { %682 = vst [vmem:[%s2820_s5] sm:$0xf] %v681_v34  ;;  %774 = vxpose.xlu1.b32.start [1/2] (short) (narrow) %v765_v35, 16 }
 0x26a   : > { %775 = vxpose.xlu1.b32.end [2/2] (short) (narrow) %v2220_v33, 16 }
 0x2e2   : > { %v790_v36 = vpop.trf.xlu1 }
 0x2e3   : > { %v811_v37 = vrot.slane %v790_v36, 4  ;;  %2233 = vmatmul.mubr.msk.f32.vlgmr.msra.gmra.mxu1 %vm258_vm0, %v790_v36 }
 0x2e4   : > { %2243 = vmatpush3.msra.mxu1 %v2769_v11  ;;  %2246 = vmatprep.mubr.msk.f32.mxu1 %vm2556_vm1, %v2555_v6 }
 0x2e5   : > { %2226 = vmatmul.mubr.msk.f32.vlgmr.msra.gmra.mxu0 %vm258_vm0, %v811_v37  ;;  %2244 = vmatprep.subr.mxu1 %v2555_v6 }
 0x2e6   : > { %2236 = vmatpush3.msra.mxu0 %v2772_v14  ;;  %v791_v38 = vpop.trf.xlu1  ;;  %2239 = vmatprep.mubr.msk.f32.mxu0 %vm2556_vm1, %v2555_v6 }
 0x2e7   : > { %v1034_v39 = vrot.slane %v791_v38, 4  ;;  %2237 = vmatprep.subr.mxu0 %v2555_v6  ;;  %2245 = vmatpush3.msra.mxu1 %v2775_v15 }
 0x2e8   : > { %2238 = vmatpush3.msra.mxu0 %v2780_v16  ;;  %2256 = vmatprep.subr.mxu1 %v2555_v6 }
 0x2e9   : > { %2249 = vmatprep.subr.mxu0 %v2735_v0  ;;  %2240 = vmatmul.mubr.msk.f32.vlgmr.msra.gmra.mxu0 %vm258_vm0, %v791_v38 }
 0x2ea   : > { %2247 = vmatmul.mubr.msk.f32.vlgmr.msra.gmra.mxu1 %vm258_vm0, %v1034_v39  ;;  %2250 = vmatpush3.msra.mxu0 %v2735_v0 }
 0x2eb   : > { %2251 = vmatprep.subr.mxu0 %v2737_v1  ;;  %2253 = vmatprep.mubr.msk.f32.mxu0 %vm258_vm0, %v2396_v40 }
 0x2ec   : > { %2252 = vmatpush3.msra.mxu0 %v2737_v1  ;;  %2257 = vmatpush3.msra.mxu1 %v2749_v5 }
 0x2ed   : > { %2254 = vmatmul.mubr.msk.f32.vlgmr.msra.gmra.mxu0 %vm258_vm0, %v2397_v41  ;;  %2263 = vmatprep.subr.mxu0 %v2555_v6 }
 0x2ee   : > { %2264 = vmatpush3.msra.mxu0 %v2747_v4  ;;  %2258 = vmatprep.subr.mxu1 %v2555_v6 }
 0x2ef   : > { %2265 = vmatprep.subr.mxu0 %v2555_v6  ;;  %2267 = vmatprep.mubr.msk.f32.mxu0 %vm2556_vm1, %v2555_v6 }
 0x2f0   : > { %2266 = vmatpush3.msra.mxu0 %v2753_v7  ;;  %2259 = vmatpush3.msra.mxu1 %v2765_v9 }
 0x2f1   : > { %2260 = vmatprep.mubr.msk.f32.mxu1 %vm2556_vm1, %v2555_v6  ;;  %2270 = vmatprep.subr.mxu1 %v2555_v6 }
 0x2f2   : > { %2277 = vmatprep.subr.mxu0 %v2555_v6 }
 0x3a3   : > { %v952_v42 = vpop.f32.mrf.mxu1 }
 0x3a5   : > { %v880_v43 = vpop.f32.mrf.mxu0  ;;  %v2234_v44 = vpop.f32.mrf.mxu1 }
 0x3a6   : > { %v953_v46 = vadd.f32 %v952_v42, %v880_v43 }
 0x3a7   : > { %v2227_v45 = vpop.f32.mrf.mxu0 }
 0x3a9   : > { %v1027_v47 = vpop.f32.mrf.mxu0 }
 0x3aa   : > { %v1031_v48 = vadd.f32 %v1027_v47, %v953_v46  ;;  %v1103_v49 = vpop.f32.mrf.mxu1 }
 0x3ab   : > { %v2241_v50 = vpop.f32.mrf.mxu0 }
 0x3ac   : > { %v1107_v51 = vadd.f32 %v1103_v49, %v1031_v48  ;;  %v2248_v52 = vpop.f32.mrf.mxu1 }
 0x3ad   : > { %v2255_v53 = vpop.f32.mrf.mxu0 }
 0x3ae   : > { %v1108_v54 = vadd.f32 %v2817_v29, %v1107_v51 }
 0x3af   : > { %v1192_v55 = vpop.f32.mrf.mxu0 }
 0x3b0   : > { %1109 = vst [vmem:[%s2820_s5 + $0x4] sm:$0xf] %v1108_v54  ;;  %1201 = vxpose.xlu0.b32.start [1/2] (short) (narrow) %v1192_v55, 16 }
 0x3b4   : > { %1202 = vxpose.xlu0.b32.end [2/2] (short) (narrow) %v2255_v53, 16 }
 0x42c   : > { %v1217_v56 = vpop.trf.xlu0 }
 0x42d   : > { %v1238_v57 = vrot.slane %v1217_v56, 4  ;;  %2268 = vmatmul.mubr.msk.f32.vlgmr.msra.gmra.mxu0 %vm258_vm0, %v1217_v56 }
 0x42e   : > { %2278 = vmatpush3.msra.mxu0 %v2769_v11  ;;  %2281 = vmatprep.mubr.msk.f32.mxu0 %vm2556_vm1, %v2555_v6 }
 0x42f   : > { %2261 = vmatmul.mubr.msk.f32.vlgmr.msra.gmra.mxu1 %vm258_vm0, %v1238_v57  ;;  %2279 = vmatprep.subr.mxu0 %v2555_v6 }
 0x430   : > { %2271 = vmatpush3.msra.mxu1 %v2772_v14  ;;  %v1218_v58 = vpop.trf.xlu0  ;;  %2274 = vmatprep.mubr.msk.f32.mxu1 %vm2556_vm1, %v2555_v6 }
 0x431   : > { %2272 = vmatprep.subr.mxu1 %v2555_v6  ;;  %v1461_v59 = vrot.slane %v1218_v58, 4  ;;  %2280 = vmatpush3.msra.mxu0 %v2775_v15 }
 0x432   : > { %2273 = vmatpush3.msra.mxu1 %v2780_v16  ;;  %2291 = vmatprep.subr.mxu0 %v2555_v6 }
 0x433   : > { %2284 = vmatprep.subr.mxu1 %v2735_v0  ;;  %2275 = vmatmul.mubr.msk.f32.vlgmr.msra.gmra.mxu1 %vm258_vm0, %v1218_v58 }
 0x434   : > { %2282 = vmatmul.mubr.msk.f32.vlgmr.msra.gmra.mxu0 %vm258_vm0, %v1461_v59  ;;  %2285 = vmatpush3.msra.mxu1 %v2735_v0 }
 0x435   : > { %2286 = vmatprep.subr.mxu1 %v2737_v1  ;;  %2288 = vmatprep.mubr.msk.f32.mxu1 %vm258_vm0, %v2398_v60 }
 0x436   : > { %2287 = vmatpush3.msra.mxu1 %v2737_v1  ;;  %2292 = vmatpush3.msra.mxu0 %v2749_v5 }
 0x437   : > { %2289 = vmatmul.mubr.msk.f32.vlgmr.msra.gmra.mxu1 %vm258_vm0, %v2399_v61  ;;  %2298 = vmatprep.subr.mxu1 %v2555_v6 }
 0x438   : > { %2299 = vmatpush3.msra.mxu1 %v2747_v4  ;;  %2302 = vmatprep.mubr.msk.f32.mxu1 %vm2556_vm1, %v2555_v6 }
 0x439   : > { %2300 = vmatprep.subr.mxu1 %v2555_v6  ;;  %2293 = vmatprep.subr.mxu0 %v2555_v6 }
 0x43a   : > { %2301 = vmatpush3.msra.mxu1 %v2753_v7  ;;  %2294 = vmatpush3.msra.mxu0 %v2765_v9 }
 0x43b   : > { %2295 = vmatprep.mubr.msk.f32.mxu0 %vm2556_vm1, %v2555_v6  ;;  %2305 = vmatprep.subr.mxu0 %v2555_v6 }
 0x43c   : > { %2312 = vmatprep.subr.mxu1 %v2555_v6 }
 0x4ed   : > { %v1379_v62 = vpop.f32.mrf.mxu0 }
 0x4ef   : > { %v1307_v63 = vpop.f32.mrf.mxu1  ;;  %v2269_v0 = vpop.f32.mrf.mxu0 }
 0x4f0   : > { %v1380_v2 = vadd.f32 %v1379_v62, %v1307_v63 }
 0x4f1   : > { %v2262_v1 = vpop.f32.mrf.mxu1 }
 0x4f3   : > { %v1454_v3 = vpop.f32.mrf.mxu1 }
 0x4f4   : > { %v1458_v4 = vadd.f32 %v1454_v3, %v1380_v2  ;;  %v1530_v5 = vpop.f32.mrf.mxu0 }
 0x4f5   : > { %v2276_v8 = vpop.f32.mrf.mxu1 }
 0x4f6   : > { %v1534_v7 = vadd.f32 %v1530_v5, %v1458_v4  ;;  %v2283_v10 = vpop.f32.mrf.mxu0 }
 0x4f7   : > { %v2290_v9 = vpop.f32.mrf.mxu1 }
 0x4f8   : > { %v1535_v12 = vadd.f32 %v2817_v29, %v1534_v7 }
 0x4f9   : > { %v1619_v13 = vpop.f32.mrf.mxu1 }
 0x4fa   : > { %1536 = vst [vmem:[%s2820_s5 + $0x8] sm:$0xf] %v1535_v12  ;;  %1628 = vxpose.xlu1.b32.start [1/2] (short) (narrow) %v1619_v13, 16 }
 0x4fe   : > { %1629 = vxpose.xlu1.b32.end [2/2] (short) (narrow) %v2290_v9, 16 }
 0x576   : > { %v1644_v17 = vpop.trf.xlu1 }
 0x577   : > { %v1665_v18 = vrot.slane %v1644_v17, 4  ;;  %2303 = vmatmul.mubr.msk.f32.vlgmr.msra.gmra.mxu1 %vm258_vm0, %v1644_v17 }
 0x578   : > { %2313 = vmatpush3.msra.mxu1 %v2769_v11  ;;  %2316 = vmatprep.mubr.msk.f32.mxu1 %vm2556_vm1, %v2555_v6 }
 0x579   : > { %2296 = vmatmul.mubr.msk.f32.vlgmr.msra.gmra.mxu0 %vm258_vm0, %v1665_v18  ;;  %2314 = vmatprep.subr.mxu1 %v2555_v6 }
 0x57a   : > { %2306 = vmatpush3.msra.mxu0 %v2772_v14  ;;  %v1645_v19 = vpop.trf.xlu1  ;;  %2309 = vmatprep.mubr.msk.f32.mxu0 %vm2556_vm1, %v2555_v6 }
 0x57b   : > { %v1888_v20 = vrot.slane %v1645_v19, 4  ;;  %2307 = vmatprep.subr.mxu0 %v2555_v6  ;;  %2315 = vmatpush3.msra.mxu1 %v2775_v15 }
 0x57c   : > { %2308 = vmatpush3.msra.mxu0 %v2780_v16 }
 0x57d   : > { %2310 = vmatmul.mubr.msk.f32.vlgmr.msra.gmra.mxu0 %vm258_vm0, %v1645_v19  ;;  %2317 = vmatmul.mubr.msk.f32.vlgmr.msra.gmra.mxu1 %vm258_vm0, %v1888_v20 }
 0x637   : > { %v1806_v11 = vpop.f32.mrf.mxu1 }
 0x639   : > { %v1734_v21 = vpop.f32.mrf.mxu0  ;;  %v2304_v14 = vpop.f32.mrf.mxu1 }
 0x63a   : > { %v1807_v23 = vadd.f32 %v1806_v11, %v1734_v21 }
 0x63b   : > { %v2297_v22 = vpop.f32.mrf.mxu0 }
 0x63d   : > { %v1881_v24 = vpop.f32.mrf.mxu0  ;;  %v1957_v25 = vpop.f32.mrf.mxu1 }
 0x63e   : > { %v1885_v6 = vadd.f32 %v1881_v24, %v1807_v23 }
 0x63f   : > { %v2311_v15 = vpop.f32.mrf.mxu0  ;;  %v2318_v26 = vpop.f32.mrf.mxu1 }
 0x640   : > { %v1961_v16 = vadd.f32 %v1957_v25, %v1885_v6 }
 0x642   : > { %v1962_v27 = vadd.f32 %v2817_v29, %v1961_v16 }
 0x644   : > { %1963 = vst [vmem:[%s2820_s5 + $0xc] sm:$0xf] %v1962_v27 }
 0x645   : > { %2493 = shalt.err (!%p2490_p3)
}
 0x646   : > { %s2494_s13 = scalar_lea.hbm %s2920_s27, 256  ;;  %s2498_s21 = scalar_lea.hbm %s2969_s4, 512 }
 0x647   : > { %p2495_p11 = scmp.ne.s32.totalorder %s2920_s27, %s2494_s13  ;;  %p2499_p4 = scmp.lt.s32.totalorder %s2920_s27, %s2969_s4 }
 0x648   : > { %p2500_p6 = scmp.lt.s32.totalorder %s2498_s21, %s2494_s13 }
 0x649   : > { %p2496_p9 = pnand %p2495_p11, %p2984_p2 }
 0x64a   : > { %p2501_p8 = por %p2500_p6, %p2499_p4 }
 0x64b   : > { %p2497_p1 = pneg %p2496_p9 }
 0x64d   : > { %p2502_p5 = pnand %p2501_p8, %p2497_p1 }
 0x64f   : > { %2505 = shalt.err (!%p2502_p5)
}
 0x650   : > { %s2558_s5 = smov 128   ;;  %s2559_s7 = smov 8  }
 0x651   : > { %2329 = dma.vmem_to_hbm [thread:$0]  (%p2984_p2), %s2915_s29, 256, %s2920_s27, %s1965_s24, %s2558_s5, %s2558_s5, %s2559_s7  }
 0x652 PF: > { %s1993_s8 = sand.u32 1, %s2536_s15   ;;  %p2985_p7 = scmp.ne.s32.totalorder %s2975_s22, 0 }
 0x653   : > { %p2986_p12 = scmp.ge.s32.totalorder %s2548_s18, 2  ;;  %s1994_s9 = scalar_lea.sflag [#allocation4], %s1993_s8 }
 0x655   : > { %p2343_p13 = pnand %p2986_p12, %p2985_p7 }
 0x657   : > { %p2344_p0 = pneg %p2343_p13 }
 0x659   : > { %2531 = dma.done.wait (%p2344_p0), %s1994_s9, 256  }
 0x65a   : > { %2533 = vsyncadd (%p2344_p0), %s1994_s9, 4294967040  ;;  %p18_p10 = scmp.ge.s32.totalorder %s2663_s11, 4   ;;  %s2987_s15 = smov %s2540_s16 }
 0x65b   : > { %s2988_s16 = smov %s2544_s17  ;;  %s2989_s17 = smov %s2679_s20 }
 0x65c   : > { %s2990_s18 = smov %s2663_s11  ;;  %20 = sbr.rel (!%p18_p10) target bundleno = 6 (0x6), region = 92 }
 0x661   :  { %1999 = vsyncpa [#allocation3], 1 }
 0x662   :  { %2001 = vsyncpa [#allocation3 + $0x1], 1 }
 0x663   :  { %2002 = vsyncpa [#allocation6], 1 }
 0x664   :  { %2003 = vsyncpa [#allocation4], 1 }
 0x665   :  { %2005 = vsyncpa [#allocation4 + $0x1], 1 }

</bundles_post_ra>
